<compile_context>
chip_gen: v7x
topology: tpu7x:2x2x1
jax: 0.10.0
libtpu: 0.0.40
codegen_flags: <defaults>
</compile_context>

<pallas_src>
import functools

import jax
import jax.numpy as jnp
from jax.experimental import pallas as pl
from jax.experimental.pallas import tpu as pltpu


def _round_up(v, m):
    return (v + m - 1) // m * m


def _cdiv(a, b):
    return -(-a // b)


def _pick_hw_tile(c, hw, itemsize, budget, buffered_tiles):
    """Largest 128-multiple tile such that `buffered_tiles` copies of a
    (C, tile) slab fit in `budget` bytes.  If the whole extent fits, use the
    full (possibly unaligned) extent so no edge blocks / masking are needed."""
    max_tile = (budget // (buffered_tiles * c * itemsize)) // 128 * 128
    max_tile = max(max_tile, 128)
    if max_tile >= hw:
        return hw
    return max_tile


# ----------------------------------------------------------------------------
# Fused single-pass kernel: grid=(B,), one (C, HW) slab per step.
# ----------------------------------------------------------------------------
def _se_fused_kernel(x_ref, w1_ref, b1_ref, w2_ref, b2_ref, o_ref, *, inv_hw):
    # x_ref: (1, C, HW)  w1: (Cr, C)  b1: (Cr, 1)  w2: (C, Cr)  b2: (C, 1)
    x2d = x_ref[0]                                           # (C, HW), native dtype
    ones_col = jnp.ones((x2d.shape[-1], 1), dtype=x2d.dtype)

    # Squeeze: spatial sum on the MXU (idle otherwise), mean over the true HW.
    pooled = jnp.dot(x2d, ones_col,
                     preferred_element_type=jnp.float32) * inv_hw   # (C, 1) f32

    # Excite (column-vector form, PyTorch weights used untransposed).
    h = jnp.dot(w1_ref[...], pooled, preferred_element_type=jnp.float32) + b1_ref[...]
    h = jnp.maximum(h, 0.0)                                  # (Cr, 1)
    z = jnp.dot(w2_ref[...], h, preferred_element_type=jnp.float32) + b2_ref[...]
    gate = jax.nn.sigmoid(z)                                 # (C, 1) f32

    # Scale in the native dtype (no full f32 copy of x).
    o_ref[0] = x2d * gate.astype(x2d.dtype)


# ----------------------------------------------------------------------------
# Two-pass fallback kernels (large C*HW): pooled-sum -> (gate + rescale).
# ----------------------------------------------------------------------------
def _pool_kernel(x_ref, psum_ref, *, hw, mask_tail):
    # x_ref: (1, C, hw_tile); psum_ref: (1, C, 1) f32, resident across t.
    t = pl.program_id(1)

    @pl.when(t == 0)
    def _init():
        psum_ref[...] = jnp.zeros_like(psum_ref)

    x2d = x_ref[0]                                           # (C, hw_tile)
    tile = x2d.shape[-1]
    if mask_tail:
        # Edge blocks may contain garbage past the true HW extent: zero them
        # before the ones-column dot (cheap VPU mask, no wrapper-side padding).
        col = jax.lax.broadcasted_iota(jnp.int32, x2d.shape, 1) + t * tile
        x2d = jnp.where(col < hw, x2d, jnp.zeros_like(x2d))
    ones_col = jnp.ones((tile, 1), dtype=x2d.dtype)
    psum_ref[0] += jnp.dot(x2d, ones_col, preferred_element_type=jnp.float32)


def _scale_kernel(x_ref, psum_ref, w1_ref, b1_ref, w2_ref, b2_ref, o_ref, *, inv_hw):
    # x_ref/o_ref: (1, C, hw_tile); psum_ref: (1, C, 1) f32 spatial sums.
    # The tiny gate FC is recomputed per (b, t) step; it hides under the DMA
    # and avoids a separate kernel launch plus a (B, C, 1) HBM round trip.
    pooled = psum_ref[0] * inv_hw                            # (C, 1) f32
    h = jnp.dot(w1_ref[...], pooled, preferred_element_type=jnp.float32) + b1_ref[...]
    h = jnp.maximum(h, 0.0)                                  # (Cr, 1)
    z = jnp.dot(w2_ref[...], h, preferred_element_type=jnp.float32) + b2_ref[...]
    gate = jax.nn.sigmoid(z)                                 # (C, 1) f32

    x2d = x_ref[0]                                           # native dtype
    o_ref[0] = x2d * gate.astype(x2d.dtype)                  # OOB writes are masked


# ----------------------------------------------------------------------------
# Wrapper
# ----------------------------------------------------------------------------
def se_module_2d(x, fc1_w, fc1_b, fc2_w, fc2_b,
                 *, fused_vmem_budget=None, tile_vmem_budget=None):
    """x: (b, c, h, w). fc1_w: (c//r, c), fc1_b: (c//r,), fc2_w: (c, c//r),
    fc2_b: (c,)  (PyTorch nn.Linear layout)."""
    b, c, h, w = x.shape
    hw = h * w
    cr = fc1_w.shape[0]
    itemsize = jnp.dtype(x.dtype).itemsize
    inv_hw = 1.0 / hw

    # -------- generation-aware VMEM budgets --------
    cap_known = True
    try:
        vmem_cap = int(pltpu.get_tpu_info().vmem_capacity_bytes)
    except Exception:
        vmem_cap = 64 * 2**20            # conservative fallback (v7x per-TC size)
        cap_known = False
    vmem_limit = min(vmem_cap * 3 // 4, 100 * 2**20)   # ~96 MiB (v5e/v6e), ~48 MiB (v7x)
    if fused_vmem_budget is None:
        fused_vmem_budget = vmem_limit * 2 // 3        # ~64 MiB / ~32 MiB
    if tile_vmem_budget is None:
        tile_vmem_budget = vmem_limit // 2             # ~48 MiB / ~24 MiB

    # Fused-path VMEM estimate: double-buffered in+out slabs (lane-padded),
    # double-buffered FC params (f32 upper bound) + Mosaic internal scratch.
    hw_lane = _round_up(hw, 128)
    param_bytes = 2 * (cr * c + c * cr + cr + c) * 4
    fused_bytes = 4 * c * hw_lane * itemsize + param_bytes + 2 * 2**20

    # v7x (2 TCs, 64 MiB VMEM): with grid=(B,) and B<=2 each core gets <=1 step
    # (no pipelining, maybe an idle core) -- prefer the HW-tiled path when the
    # per-sample slab is large enough for tiling to matter.
    is_v7x_like = cap_known and vmem_cap <= 64 * 2**20
    small_batch_large_slab = (is_v7x_like and b <= 2
                              and c * hw * itemsize >= 2 * 2**20)

    x3 = x.reshape(b, c, hw)             # free: trailing-dim flatten
    w1 = fc1_w
    b1 = fc1_b.reshape(cr, 1)
    w2 = fc2_w
    b2 = fc2_b.reshape(c, 1)

    if fused_bytes <= fused_vmem_budget and not small_batch_large_slab:
        # ------------------------- fused single pass -------------------------
        # Block last two dims equal the full array dims -> no padding needed;
        # unaligned HW only costs masked vst on the tail lanes.
        out3 = pl.pallas_call(
            functools.partial(_se_fused_kernel, inv_hw=inv_hw),
            out_shape=jax.ShapeDtypeStruct((b, c, hw), x.dtype),
            grid=(b,),
            in_specs=[
                pl.BlockSpec((1, c, hw), lambda i: (i, 0, 0)),
                pl.BlockSpec((cr, c), lambda i: (0, 0)),
                pl.BlockSpec((cr, 1), lambda i: (0, 0)),
                pl.BlockSpec((c, cr), lambda i: (0, 0)),
                pl.BlockSpec((c, 1), lambda i: (0, 0)),
            ],
            out_specs=pl.BlockSpec((1, c, hw), lambda i: (i, 0, 0)),
            compiler_params=pltpu.CompilerParams(
                dimension_semantics=("parallel",),
                vmem_limit_bytes=vmem_limit),
            cost_estimate=pl.CostEstimate(
                flops=3 * b * c * hw + 4 * b * c * cr,
                transcendentals=b * c,
                bytes_accessed=2 * b * c * hw * itemsize),
        )(x3, w1, b1, w2, b2)
    else:
        # ----------------- two-pass path for large C*HW slabs ----------------
        # Pass 1: masked spatial sums accumulated across HW tiles (reduction
        # axis last; resident (1,C,1) accumulator output). Tile sized counting
        # only the double-buffered input (the accumulator is tiny).
        tile_p = _pick_hw_tile(c, hw, itemsize, tile_vmem_budget, buffered_tiles=2)
        n_tp = _cdiv(hw, tile_p)
        psum = pl.pallas_call(
            functools.partial(_pool_kernel, hw=hw, mask_tail=(hw % tile_p != 0)),
            out_shape=jax.ShapeDtypeStruct((b, c, 1), jnp.float32),
            grid=(b, n_tp),
            in_specs=[pl.BlockSpec((1, c, tile_p), lambda i, t: (i, 0, t))],
            out_specs=pl.BlockSpec((1, c, 1), lambda i, t: (i, 0, 0)),
            compiler_params=pltpu.CompilerParams(
                dimension_semantics=("parallel", "arbitrary"),
                vmem_limit_bytes=vmem_limit),
            cost_estimate=pl.CostEstimate(
                flops=2 * b * c * hw, transcendentals=0,
                bytes_accessed=b * c * hw * itemsize),
        )(x3)

        # Pass 2: gate + channel-wise rescale, tiled over (B, HW); edge-block
        # writes are masked by Pallas so no wrapper-side pad/slice is needed.
        tile_s = _pick_hw_tile(c, hw, itemsize, tile_vmem_budget, buffered_tiles=4)
        n_ts = _cdiv(hw, tile_s)
        out3 = pl.pallas_call(
            functools.partial(_scale_kernel, inv_hw=inv_hw),
            out_shape=jax.ShapeDtypeStruct((b, c, hw), x.dtype),
            grid=(b, n_ts),
            in_specs=[
                pl.BlockSpec((1, c, tile_s), lambda i, t: (i, 0, t)),
                pl.BlockSpec((1, c, 1), lambda i, t: (i, 0, 0)),
                pl.BlockSpec((cr, c), lambda i, t: (0, 0)),
                pl.BlockSpec((cr, 1), lambda i, t: (0, 0)),
                pl.BlockSpec((c, cr), lambda i, t: (0, 0)),
                pl.BlockSpec((c, 1), lambda i, t: (0, 0)),
            ],
            out_specs=pl.BlockSpec((1, c, tile_s), lambda i, t: (i, 0, t)),
            compiler_params=pltpu.CompilerParams(
                dimension_semantics=("parallel", "parallel"),
                vmem_limit_bytes=vmem_limit),
            cost_estimate=pl.CostEstimate(
                flops=b * c * hw + 4 * b * c * cr * n_ts,
                transcendentals=b * c * n_ts,
                bytes_accessed=2 * b * c * hw * itemsize),
        )(x3, psum, w1, b1, w2, b2)

    return out3.reshape(b, c, h, w)


# ----------------------------------------------------------------------------
# Reference + self-test
# ----------------------------------------------------------------------------
def _reference(x, fc1_w, fc1_b, fc2_w, fc2_b):
    pooled = jnp.mean(x, axis=(2, 3))                        # (B, C)
    y = jnp.maximum(pooled @ fc1_w.T + fc1_b, 0.0)
    y = jax.nn.sigmoid(y @ fc2_w.T + fc2_b)
    return x * y[:, :, None, None]


if __name__ == "__main__":
    def make_inputs(key, b, c, h, w, r):
        cr = max(c // r, 1)
        ks = jax.random.split(key, 5)
        x = jax.random.normal(ks[0], (b, c, h, w), dtype=jnp.float32)
        fc1_w = jax.random.normal(ks[1], (cr, c), dtype=jnp.float32) * 0.1
        fc1_b = jax.random.normal(ks[2], (cr,), dtype=jnp.float32) * 0.1
        fc2_w = jax.random.normal(ks[3], (c, cr), dtype=jnp.float32) * 0.1
        fc2_b = jax.random.normal(ks[4], (c,), dtype=jnp.float32) * 0.1
        return x, fc1_w, fc1_b, fc2_w, fc2_b

    ok = True
    key = jax.random.PRNGKey(0)

    # 1) Main shape -> fused single-pass path.
    args = make_inputs(key, 2, 32, 16, 16, 16)
    out = jax.block_until_ready(se_module_2d(*args))
    ref = _reference(*args)
    ok = ok and bool(jnp.allclose(out, ref, atol=1e-5, rtol=1e-5))

    # 2) Same shape forced onto the tiled two-pass path (exercises HW tiling,
    #    the cross-tile pooled-sum accumulator, and the fused gate+scale pass).
    out_t = jax.block_until_ready(
        se_module_2d(*args, fused_vmem_budget=0,
                     tile_vmem_budget=2 * 32 * 4 * 128))
    ok = ok and bool(jnp.allclose(out_t, ref, atol=1e-5, rtol=1e-5))

    # 3) Non-128-aligned spatial extent on the fused path (no wrapper pad).
    args2 = make_inputs(jax.random.PRNGKey(0), 2, 8, 5, 7, 4)
    out2 = jax.block_until_ready(se_module_2d(*args2))
    ref2 = _reference(*args2)
    ok = ok and bool(jnp.allclose(out2, ref2, atol=1e-5, rtol=1e-5))

    # 4) Non-128-aligned extent forced onto the two-pass path with an edge
    #    tile (exercises the in-kernel tail mask and masked edge-block writes).
    args3 = make_inputs(jax.random.PRNGKey(0), 2, 8, 9, 21, 4)
    out3 = jax.block_until_ready(
        se_module_2d(*args3, fused_vmem_budget=0,
                     tile_vmem_budget=2 * 8 * 4 * 128))
    ref3 = _reference(*args3)
    ok = ok and bool(jnp.allclose(out3, ref3, atol=1e-5, rtol=1e-5))

    assert ok, "mismatch vs reference"
    print("KERNEL_OK")
</pallas_src>

<mosaic_0001>
module attributes {stable_mosaic.version = 11 : i64} {
  func.func @_se_fused_kernel(%arg0: i32, %arg1: memref<1x32x256xf32, #tpu.memory_space<vmem>>, %arg2: memref<2x32xf32, #tpu.memory_space<vmem>>, %arg3: memref<2x1xf32, #tpu.memory_space<vmem>>, %arg4: memref<32x2xf32, #tpu.memory_space<vmem>>, %arg5: memref<32x1xf32, #tpu.memory_space<vmem>>, %arg6: memref<1x32x256xf32, #tpu.memory_space<vmem>>) attributes {dimension_semantics = [#tpu.dimension_semantics<parallel>], iteration_bounds = array<i64: 2>, scalar_prefetch = 0 : i64, scratch_operands = 0 : i64, tpu.core_type = #tpu.core_type<tc>, window_params = [{transform_indices = @transform_0, window_bounds = array<i64: 1, 32, 256>}, {pipeline_mode = #tpu.pipeline_mode<synchronous>, transform_indices = @transform_1, window_bounds = array<i64: 2, 32>}, {pipeline_mode = #tpu.pipeline_mode<synchronous>, transform_indices = @transform_2, window_bounds = array<i64: 2, 1>}, {pipeline_mode = #tpu.pipeline_mode<synchronous>, transform_indices = @transform_3, window_bounds = array<i64: 32, 2>}, {pipeline_mode = #tpu.pipeline_mode<synchronous>, transform_indices = @transform_4, window_bounds = array<i64: 32, 1>}, {transform_indices = @transform_5, window_bounds = array<i64: 1, 32, 256>}]} {
    %c0 = arith.constant 0 : index
    %c0_0 = arith.constant 0 : index
    %c0_1 = arith.constant 0 : index
    %0 = vector.load %arg1[%c0, %c0_0, %c0_1] : memref<1x32x256xf32, #tpu.memory_space<vmem>>, vector<1x32x256xf32>
    %1 = vector.shape_cast %0 : vector<1x32x256xf32> to vector<32x256xf32>
    %cst = arith.constant 1.000000e+00 : f32
    %2 = vector.broadcast %cst : f32 to vector<256x1xf32>
    %cst_2 = arith.constant dense<0.000000e+00> : vector<32x1xf32>
    %3 = tpu.matmul %1, %2, %cst_2 {dimension_numbers = #tpu.dot_dimension_numbers<[1], [0], [0], [1], [0, 0, 1, 1], [], []>} : vector<32x256xf32>, vector<256x1xf32>, vector<32x1xf32> -> vector<32x1xf32>
    %cst_3 = arith.constant 3.906250e-03 : f32
    %4 = vector.broadcast %cst_3 : f32 to vector<32x1xf32>
    %5 = arith.mulf %3, %4 : vector<32x1xf32>
    %c0_4 = arith.constant 0 : index
    %c0_5 = arith.constant 0 : index
    %6 = vector.load %arg2[%c0_4, %c0_5] : memref<2x32xf32, #tpu.memory_space<vmem>>, vector<2x32xf32>
    %cst_6 = arith.constant dense<0.000000e+00> : vector<2x1xf32>
    %7 = tpu.matmul %6, %5, %cst_6 {dimension_numbers = #tpu.dot_dimension_numbers<[1], [0], [0], [1], [0, 0, 1, 1], [], []>} : vector<2x32xf32>, vector<32x1xf32>, vector<2x1xf32> -> vector<2x1xf32>
    %c0_7 = arith.constant 0 : index
    %c0_8 = arith.constant 0 : index
    %8 = vector.load %arg3[%c0_7, %c0_8] : memref<2x1xf32, #tpu.memory_space<vmem>>, vector<2x1xf32>
    %9 = arith.addf %7, %8 : vector<2x1xf32>
    %cst_9 = arith.constant 0.000000e+00 : f32
    %10 = vector.broadcast %cst_9 : f32 to vector<2x1xf32>
    %11 = arith.maximumf %9, %10 : vector<2x1xf32>
    %c0_10 = arith.constant 0 : index
    %c0_11 = arith.constant 0 : index
    %12 = vector.load %arg4[%c0_10, %c0_11] : memref<32x2xf32, #tpu.memory_space<vmem>>, vector<32x2xf32>
    %cst_12 = arith.constant dense<0.000000e+00> : vector<32x1xf32>
    %13 = tpu.matmul %12, %11, %cst_12 {dimension_numbers = #tpu.dot_dimension_numbers<[1], [0], [0], [1], [0, 0, 1, 1], [], []>} : vector<32x2xf32>, vector<2x1xf32>, vector<32x1xf32> -> vector<32x1xf32>
    %c0_13 = arith.constant 0 : index
    %c0_14 = arith.constant 0 : index
    %14 = vector.load %arg5[%c0_13, %c0_14] : memref<32x1xf32, #tpu.memory_space<vmem>>, vector<32x1xf32>
    %15 = arith.addf %13, %14 : vector<32x1xf32>
    %16 = arith.negf %15 : vector<32x1xf32>
    %17 = math.exp %16 : vector<32x1xf32>
    %cst_15 = arith.constant 1.000000e+00 : f32
    %18 = vector.broadcast %cst_15 : f32 to vector<32x1xf32>
    %19 = arith.addf %18, %17 : vector<32x1xf32>
    %20 = arith.divf %18, %19 : vector<32x1xf32>
    %21 = vector.broadcast %20 : vector<32x1xf32> to vector<32x256xf32>
    %22 = arith.mulf %1, %21 : vector<32x256xf32>
    %c0_16 = arith.constant 0 : index
    %c0_17 = arith.constant 0 : index
    %c0_18 = arith.constant 0 : index
    %23 = vector.load %arg6[%c0_16, %c0_17, %c0_18] : memref<1x32x256xf32, #tpu.memory_space<vmem>>, vector<1x32x256xf32>
    %24 = vector.shape_cast %23 : vector<1x32x256xf32> to vector<32x256xf32>
    %25 = vector.shape_cast %22 : vector<32x256xf32> to vector<1x32x256xf32>
    tpu.vector_store %arg6[%c0_16, %c0_17, %c0_18], %25 {strides = array<i32>} : memref<1x32x256xf32, #tpu.memory_space<vmem>>, vector<1x32x256xf32>,
    return
  }
  func.func @transform_0(%arg0: i32) -> (i32, i32, i32) {
    %c0_i32 = arith.constant 0 : i32
    %c0_i32_0 = arith.constant 0 : i32
    %c0_i32_1 = arith.constant 0 : i32
    return %arg0, %c0_i32, %c0_i32_0 : i32, i32, i32
  }
  func.func @transform_1(%arg0: i32) -> (i32, i32) {
    %c0_i32 = arith.constant 0 : i32
    %c0_i32_0 = arith.constant 0 : i32
    %c0_i32_1 = arith.constant 0 : i32
    return %c0_i32, %c0_i32_0 : i32, i32
  }
  func.func @transform_2(%arg0: i32) -> (i32, i32) {
    %c0_i32 = arith.constant 0 : i32
    %c0_i32_0 = arith.constant 0 : i32
    %c0_i32_1 = arith.constant 0 : i32
    return %c0_i32, %c0_i32_0 : i32, i32
  }
  func.func @transform_3(%arg0: i32) -> (i32, i32) {
    %c0_i32 = arith.constant 0 : i32
    %c0_i32_0 = arith.constant 0 : i32
    %c0_i32_1 = arith.constant 0 : i32
    return %c0_i32, %c0_i32_0 : i32, i32
  }
  func.func @transform_4(%arg0: i32) -> (i32, i32) {
    %c0_i32 = arith.constant 0 : i32
    %c0_i32_0 = arith.constant 0 : i32
    %c0_i32_1 = arith.constant 0 : i32
    return %c0_i32, %c0_i32_0 : i32, i32
  }
  func.func @transform_5(%arg0: i32) -> (i32, i32, i32) {
    %c0_i32 = arith.constant 0 : i32
    %c0_i32_0 = arith.constant 0 : i32
    %c0_i32_1 = arith.constant 0 : i32
    return %arg0, %c0_i32, %c0_i32_0 : i32, i32, i32
  }
}

</mosaic_0001>

<bundles_post_ra>
// kernel: tpu_custom_call.1
= control target key start
LH: loop header
LB: loop body
LE: loop exit
PB: predicated region body
PF: predicated region fallthrough
CT: control target
= control target key end

     0   :  { %10 = vsyncpa [#allocation3], 0  ;;  %s1245_s0 = inlined_call_operand.hbm [shape: f32[2,32,256], index: 0, kind: input, shape index: {}]   ;;  %s1246_s1 = inlined_call_operand.vmem [shape: f32[2,32], index: 1, kind: input, shape index: {}]   ;;  %s1247_s2 = inlined_call_operand.vmem [shape: f32[2,1], index: 2, kind: input, shape index: {}]   ;;  %s1248_s3 = inlined_call_operand.vmem [shape: f32[32,2], index: 3, kind: input, shape index: {}]   ;;  %s1249_s4 = inlined_call_operand.vmem [shape: f32[32,1], index: 4, kind: input, shape index: {}]   ;;  %s1250_s5 = inlined_call_operand.hbm [shape: f32[2,32,256], index: 5, kind: output, shape index: {}]  }
   0x1   :  { %12 = vsyncpa [#allocation3 + $0x1], 0 }
   0x2   :  { %13 = vsyncpa [#allocation4], 0 }
   0x3   :  { %15 = vsyncpa [#allocation4 + $0x1], 0  ;;  %s1007_s18 = smov 0   ;;  %s1009_s19 = smov 0  }
   0x4   :  { %s1011_s20 = smov 0   ;;  %s1013_s21 = smov 0  }
   0x5 LB: > { %s1028_s22 = sadd.s32 4294967295, %s964_s21   ;;  %s674_s23 = sadd.s32 4294967294, %s964_s21   ;;  %s964_s21 = sphi %s1013_s21, %s1263_s21   ;;  %s960_s20 = sphi %s1011_s20, %s1262_s20   ;;  %s956_s19 = sphi %s1009_s19, %s1261_s19   ;;  %s952_s18 = sphi %s1007_s18, %s1260_s18  }
   0x6   : > { %s1032_s24 = sadd.s32 1, %s964_s21   ;;  %s28_s25 = sadd.s32 1, %s960_s20 }
   0x7   : > { %s25_s26 = ssub.s32 %s964_s21, %s1032_s24  ;;  %p35_p0 = scmp.ne.s32.totalorder %s960_s20, %s956_s19 }
   0x8   : > { %p26_p1 = scmp.eq.s32.totalorder %s25_s26, 0  ;;  %p36_p2 = scmp.eq.s32.totalorder %s964_s21, 0 }
   0x9   : > { %p41_p3 = scmp.ne.s32.totalorder %s956_s19, %s952_s18  ;;  %p42_p4 = scmp.eq.s32.totalorder %s1028_s22, 0 }
   0xa   : > { %s1044_s27 = scalar_select %p26_p1, %s960_s20, %s28_s25  }
   0xb   : > { %p1046_p5 = por %p36_p2, %p35_p0  ;;  %p1050_p6 = por %p42_p4, %p41_p3 }
   0xc   : > { %p149_p7 = scmp.eq.s32.totalorder %s1028_s22, 1  ;;  %p155_p8 = scmp.eq.s32.totalorder %s674_s23, 1 }
   0xd   : > { %p807_p10 = scmp.lt.s32.totalorder %s964_s21, 2  ;;  %s187_s7 = sand.u32 1, %s960_s20  }
   0xe   : > { %p1057_p11 = por %p149_p7, %p35_p0  ;;  %p1061_p12 = por %p155_p8, %p41_p3 }
   0xf   : > { %s698_s8 = sshll.u32 %s964_s21, 10  ;;  %s677_s9 = sshll.u32 %s187_s7, 6 }
  0x10   : > { %s1254_s30 = scalar_select %p1057_p11, 1, 0 }
  0x11   : > { %s1255_s6 = scalar_select %p1061_p12, 1, 0 }
  0x12   : > { %s1070_s12 = scalar_lea.hbm %s1245_s0, %s698_s8  ;;  %s191_s13 = scalar_lea.vmem [#allocation2], %s677_s9 }
  0x13   : > { %s198_s14 = sshll.u32 %s191_s13, 4  ;;  %p1074_p13 = pnand %p807_p10, %p1046_p5  ;;  %s1078_s14 = int_to_ptr.vmem [resolvable:$true] %s198_s14 }
  0x14   : > { %s1080_s16 = scalar_lea.sflag [#allocation3], %s187_s7  ;;  %s868_s17 = scalar_lea.hbm %s1070_s12, 1024 }
  0x15   : > { %p869_p0 = scmp.ne.s32.totalorder %s1070_s12, %s868_s17  ;;  %p870_p1 = pneg %p1074_p13 }
  0x16   : > { %s873_s26 = scalar_lea.hbm %s1245_s0, 2048  ;;  %p874_p4 = scmp.lt.u32.totalorder %s1070_s12, %s1245_s0 }
  0x17   : > { %p871_p2 = pnand %p870_p1, %p869_p0  ;;  %p875_p5 = scmp.lt.u32.totalorder %s873_s26, %s868_s17 }
  0x18   : > { %p877_p8 = scmp.lt.u32.totalorder %s868_s17, %s1070_s12 }
  0x19   : > { %p872_p3 = pneg %p871_p2  ;;  %p876_p7 = por %p875_p5, %p874_p4 }
  0x1b   : > { %p878_p10 = por %p877_p8, %p876_p7 }
  0x1d   : > { %p879_p9 = pnand %p878_p10, %p872_p3 }
  0x1f   : > { %882 = shalt.err (!%p879_p9)
}
  0x20   : > { %s883_s7 = scalar_lea.vmem %s1078_s14, 1024  ;;  %s966_s9 = smov [#allocation2]  }
  0x21   : > { %p884_p0 = scmp.ne.s32.totalorder %s1078_s14, %s883_s7  ;;  %s888_s10 = sshll.u32 %s966_s9, 4  ;;  %s889_s10 = int_to_ptr.vmem [resolvable:$false] %s888_s10 }
  0x22   : > { %s890_s11 = scalar_lea.vmem %s889_s10, 2048  ;;  %p891_p11 = scmp.lt.s32.totalorder %s1078_s14, %s889_s10 }
  0x23   : > { %p886_p2 = pnand %p884_p0, %p870_p1  ;;  %p892_p4 = scmp.lt.s32.totalorder %s890_s11, %s883_s7 }
  0x25   : > { %p887_p12 = pneg %p886_p2  ;;  %p893_p5 = por %p892_p4, %p891_p11 }
  0x27   : > { %p894_p7 = pnand %p893_p5, %p887_p12 }
  0x29   : > { %897 = shalt.err (!%p894_p7)
}
  0x2a   : > { %s967_s13 = smov 256   ;;  %s968_s17 = smov 16  }
  0x2b   : > { %802 = dma.hbm_to_vmem [thread:$0]  (!%p1074_p13), %s1070_s12, 1024, %s1078_s14, %s1080_s16, %s967_s13, %s967_s13, %s968_s17  }
  0x2c   : > { %p680_p9 = scmp.ge.s32.totalorder %s964_s21, 1  ;;  %p206_p1 = scmp.lt.s32.totalorder %s964_s21, 3 }
  0x2e   : > { %p207_p3 = pnand %p680_p9, %p206_p1 }
  0x2f   : > { %s1111_s23 = sand.u32 (!%p207_p3), 1, %s956_s19  }
  0x30   : > { %210 = sbr.rel (%p207_p3) target bundleno = 935 (0x3a7), region = 40  ;;  %s681_s25 = sshll.u32 (!%p207_p3), %s1111_s23, 6 }
  0x31   : > { %s213_s26 = scalar_lea.sflag (!%p207_p3), [#allocation3], %s1111_s23  ;;  %s1117_s28 = scalar_lea.vmem (!%p207_p3), [#allocation2], %s681_s25 }
  0x37   : > { %943 = dma.done.wait (%p1050_p6), %s213_s26, 1024  }
  0x38   : > { %945 = vsyncadd (%p1050_p6), %s213_s26, 4294966272  ;;  %v969_v0 = vmov 1.0|1.0   ;;  %v1124_v1 = vld [vmem:[%s1117_s28 + $0x8] sm:$0xff]  ;;  %v1128_v2 = vld [vmem:[%s1117_s28] sm:$0xff]  ;;  %v970_v9 = vmov 0.0|0.0  }
  0x39   : > { %773 = vmatprep.subr.bf16.mxu0 %v969_v0  ;;  %315 = vmatprep.mubr.f32.mxu0 %v1124_v1  ;;  %v1131_v3 = vld [vmem:[%s1117_s28 + $0x18] sm:$0xff]  ;;  %v1136_v4 = vld [vmem:[%s1117_s28 + $0x10] sm:$0xff]  ;;  %v1139_v5 = vld [vmem:[%s1117_s28 + $0x28] sm:$0xff]  ;;  %vm971_vm0 = vmmov 0   ;;  %v972_v10 = vmov 0.0   ;;  %vm342_vm1 = vcmask 261120  }
  0x3a   : > { %774 = vmatpush3.bf16.msra.mxu0 %v969_v0  ;;  %v1144_v6 = vld [vmem:[%s1117_s28 + $0x20] sm:$0xff]  ;;  %v1147_v7 = vld [vmem:[%s1117_s28 + $0x38] sm:$0xff]  ;;  %v1152_v8 = vld [vmem:[%s1117_s28 + $0x30] sm:$0xff]  ;;  %789 = vmatprep.subr.bf16.mxu1 %v970_v9  ;;  %vm425_vm2 = vcmask 15360   ;;  %vm438_vm3 = vcmask 1041408   ;;  %v973_v39 = vmov 0  }
  0x3b   : > { %775 = vmatprep.subr.bf16.mxu0 %v969_v0  ;;  %762 = vmatprep.mubr.msk.f32.mxu1 %vm971_vm0, %v972_v10  ;;  %v340_v29 = vld [vmem:[%s1246_s1] sm:$0x3]  ;;  %v418_v36 = vld [vmem:[%s1248_s3 + $0x8] sm:$0xff]  ;;  %v419_v37 = vld [vmem:[%s1248_s3 + $0x10] sm:$0xff]  ;;  %s242_s7 = scalar_lea.vmem [#allocation5], %s681_s25  ;;  %s699_s10 = sshll.u32 %s1028_s22, 10 }
  0x3c   : > { %v417_v30 = vld [vmem:[%s1248_s3] sm:$0xff]  ;;  %v420_v38 = vld [vmem:[%s1248_s3 + $0x18] sm:$0xff]  ;;  %850 = vset.pattern.permute.xlu0 %v973_v39  ;;  %851 = vset.pattern.permute.xlu1 %v973_v39  ;;  %v422_v40 = vld [vmem:[%s1249_s4 + $0x8] sm:$0xff]  ;;  %s601_s9 = sshll.u32 %s242_s7, 4  ;;  %s1199_s13 = scalar_lea.hbm %s1250_s5, %s699_s10  ;;  %s1194_s9 = int_to_ptr.vmem [resolvable:$true] %s601_s9 }
  0x3d   : > { %v341_v31 = vld [vmem:[%s1247_s2] sm:$0x3]  ;;  %v424_v46 = vld [vmem:[%s1249_s4 + $0x18] sm:$0xff]  ;;  %v423_v48 = vld [vmem:[%s1249_s4 + $0x10] sm:$0xff]  ;;  %s588_s22 = scalar_lea.sflag [#allocation4], %s1111_s23  ;;  %s898_s17 = scalar_lea.vmem %s1194_s9, 1024 }
  0x3e   : > { %776 = vmatpush3.bf16.msra.mxu0 %v969_v0  ;;  %v421_v41 = vld [vmem:[%s1249_s4] sm:$0xff]  ;;  %p899_p6 = scmp.ne.s32.totalorder %s1194_s9, %s898_s17  ;;  %p1257_p11 = scmp.ne.s32.totalorder %s1254_s30, 0 }
  0x3f   : > { %777 = vmatprep.subr.bf16.mxu0 %v969_v0  ;;  %s974_s26 = smov [#allocation5]  }
  0x40   : > { %p900_p12 = pnand %p899_p6, %p1257_p11  ;;  %s902_s28 = sshll.u32 %s974_s26, 4  ;;  %s903_s28 = int_to_ptr.vmem [resolvable:$false] %s902_s28 }
  0x41   : > { %s904_s29 = scalar_lea.vmem %s903_s28, 2048  ;;  %p905_p8 = scmp.lt.s32.totalorder %s1194_s9, %s903_s28 }
  0x42   : > { %778 = vmatpush3.bf16.msra.mxu0 %v969_v0  ;;  %p901_p13 = pneg %p900_p12  ;;  %p906_p10 = scmp.lt.s32.totalorder %s904_s29, %s898_s17 }
  0x43   : > { %779 = vmatprep.subr.bf16.mxu0 %v969_v0 }
  0x44   : > { %p907_p0 = por %p906_p10, %p905_p8 }
  0x46   : > { %780 = vmatpush3.bf16.msra.mxu0 %v969_v0  ;;  %p908_p2 = pnand %p907_p0, %p901_p13 }
  0x47   : > { %781 = vmatprep.subr.bf16.mxu0 %v969_v0 }
  0x4a   : > { %782 = vmatpush3.bf16.msra.mxu0 %v969_v0 }
  0x4b   : > { %783 = vmatprep.subr.bf16.mxu0 %v969_v0 }
  0x4e   : > { %784 = vmatpush3.bf16.msra.mxu0 %v969_v0 }
  0x4f   : > { %785 = vmatprep.subr.bf16.mxu0 %v969_v0 }
  0x52   : > { %786 = vmatpush3.bf16.msra.mxu0 %v969_v0 }
  0x53   : > { %787 = vmatprep.subr.bf16.mxu0 %v969_v0 }
  0x56   : > { %788 = vmatpush3.bf16.msra.mxu0 %v969_v0 }
  0x59   : > { %316 = vmatmul.mubr.f32.vlgmr.msra.gmra.mrb[0].mxu0 %v1128_v2 }
  0x5a   : > { %320 = vmatprep.mubr.f32.mxu0 %v1131_v3 }
  0x5d   : > { %321 = vmatmul.mubr.f32.gmra.mrb[2].mxu0 %v1136_v4 }
  0x5e   : > { %325 = vmatprep.mubr.f32.mxu0 %v1139_v5 }
  0x61   : > { %326 = vmatmul.mubr.f32.gmra.mrb[4].mxu0 %v1144_v6 }
  0x62   : > { %330 = vmatprep.mubr.f32.mxu0 %v1147_v7 }
  0x65   : > { %331 = vmatmul.mubr.f32.gmra.mrb[6].mxu0 %v1152_v8 }
 0x12c   : > { %v732_v11 = vpop.f32.mrb[0].mxu0 }
 0x12d   : > { %v733_v12 = vpop.f32.mrb[1].mxu0 }
 0x12e   : > { %v734_v13 = vadd.f32 %v733_v12, %v732_v11 }
 0x130   : > { %v735_v14 = vpop.f32.mrb[2].mxu0  ;;  %v336_v17 = vmul.f32 0.00390625, %v734_v13 }
 0x131   : > { %v736_v15 = vpop.f32.mrb[3].mxu0 }
 0x132   : > { %v737_v16 = vadd.f32 %v736_v15, %v735_v14 }
 0x134   : > { %v337_v18 = vmul.f32 0.00390625, %v737_v16  ;;  %v738_v19 = vpop.f32.mrb[4].mxu0 }
 0x135   : > { %v739_v20 = vpop.f32.mrb[5].mxu0 }
 0x136   : > { %v740_v21 = vadd.f32 %v739_v20, %v738_v19  ;;  %v790_v22 = vpack.c.bf16 %v337_v18, %v336_v17 }
 0x138   : > { %v741_v23 = vpop.f32.mrb[6].mxu0  ;;  %791 = vmatpush3.bf16.msra.mxu1 %v790_v22  ;;  %v338_v26 = vmul.f32 0.00390625, %v740_v21 }
 0x139   : > { %v742_v24 = vpop.f32.mrb[7].mxu0  ;;  %792 = vmatprep.subr.bf16.mxu1 %v970_v9 }
 0x13a   : > { %v743_v25 = vadd.f32 %v742_v24, %v741_v23 }
 0x13c   : > { %v339_v27 = vmul.f32 0.00390625, %v743_v25 }
 0x13e   : > { %v793_v28 = vpack.c.bf16 %v339_v27, %v338_v26 }
 0x140   : > { %794 = vmatpush3.bf16.msra.mxu1 %v793_v28 }
 0x143   : > { %763 = vmatmul.mubr.msk.f32.vlgmr.msra.gmra.mrb[0].mxu1 %vm342_vm1, %v340_v29 }
 0x144   : > { %767 = vmatprep.mubr.msk.f32.mxu1 %vm425_vm2, %v417_v30 }
 0x216   : > { %v412_v32 = vpop.f32.mrb[0].mxu1 }
 0x217   : > { %v413_v33 = vadd.f32 %v412_v32, %v341_v31  ;;  %v764_v34 = vpop.f32.mrb[1].mxu1 }
 0x219   : > { %v416_v35 = vmax.f32 %v413_v33, 0.0 }
 0x21b   : > { %765 = vmatprep.subr.msk.mxu1 %vm438_vm3, %v416_v35 }
 0x21c   : > { %766 = vmatpush3.msk.msra.mxu1 %vm438_vm3, %v416_v35 }
 0x21d   : > { %768 = vmatmul.mubr.msk.f32.vlgmr.msra.gmra.mrb[2].mxu1 %vm425_vm2, %v418_v36 }
 0x21e   : > { %770 = vmatprep.mubr.msk.f32.mxu1 %vm425_vm2, %v419_v37 }
 0x221   : > { %771 = vmatmul.mubr.msk.f32.gmra.mrb[4].mxu1 %vm425_vm2, %v420_v38 }
 0x2f0   : > { %v769_v42 = vpop.f32.mrb[2].mxu1 }
 0x2f1   : > { %v514_v43 = vadd.f32 %v769_v42, %v422_v40  ;;  %v508_v44 = vpop.f32.mrb[3].mxu1 }
 0x2f2   : > { %v509_v45 = vadd.f32 %v508_v44, %v421_v41 }
 0x2f3   : > { %v690_v47 = vmul.f32 -1.442695, %v514_v43 }
 0x2f4   : > { %v689_v49 = vmul.f32 -1.442695, %v509_v45  ;;  %v772_v50 = vpop.f32.mrb[4].mxu1 }
 0x2f5   : > { %852 = vpow2.f32 %v690_v47  ;;  %v524_v51 = vadd.f32 %v772_v50, %v424_v46  ;;  %v518_v52 = vpop.f32.mrb[5].mxu1 }
 0x2f6   : > { %854 = vpow2.f32 %v689_v49  ;;  %v519_v53 = vadd.f32 %v518_v52, %v423_v48 }
 0x2f7   : > { %v692_v54 = vmul.f32 -1.442695, %v524_v51 }
 0x2f8   : > { %v691_v55 = vmul.f32 -1.442695, %v519_v53 }
 0x2f9   : > { %856 = vpow2.f32 %v692_v54 }
 0x2fa   : > { %858 = vpow2.f32 %v691_v55 }
 0x2ff   : > { %v853_v56 = vpop.eup %852 }
 0x300   : > { %v855_v57 = vpop.eup %854  ;;  %v540_v59 = vadd.f32 1.0, %v853_v56 }
 0x301   : > { %v539_v58 = vadd.f32 1.0, %v855_v57 }
 0x303   : > { %v857_v60 = vpop.eup %856  ;;  %860 = vrcp.f32 %v539_v58 }
 0x304   : > { %v859_v61 = vpop.eup %858  ;;  %862 = vrcp.f32 %v540_v59  ;;  %v542_v63 = vadd.f32 1.0, %v857_v60 }
 0x305   : > { %v541_v62 = vadd.f32 1.0, %v859_v61 }
 0x307   : > { %864 = vrcp.f32 %v541_v62 }
 0x308   : > { %866 = vrcp.f32 %v542_v63 }
 0x30d   : > { %v861_v0 = vpop.eup %860 }
 0x30e   : > { %553 = vperm.xlu0 %850, %v861_v0   ;;  %v863_v9 = vpop.eup %862 }
 0x311   : > { %v865_v10 = vpop.eup %864 }
 0x312   : > { %563 = vperm.xlu1 %851, %v865_v10   ;;  %558 = vperm.xlu0 %850, %v863_v9   ;;  %v867_v11 = vpop.eup %866 }
 0x316   : > { %568 = vperm.xlu1 %851, %v867_v11  }
 0x38d   : > { %v554_v12 = vpop.permute.xlu0 %553 }
 0x38e   : > { %v571_v13 = vmul.f32 %v554_v12, %v1128_v2  ;;  %v572_v14 = vmul.f32 %v554_v12, %v1124_v1 }
 0x390   : > { %579 = vst [vmem:[%s242_s7] sm:$0xff] %v571_v13  ;;  %580 = vst [vmem:[%s242_s7 + $0x8] sm:$0xff] %v572_v14 }
 0x391   : > { %v564_v15 = vpop.permute.xlu1 %563  ;;  %v559_v16 = vpop.permute.xlu0 %558 }
 0x392   : > { %v575_v17 = vmul.f32 %v564_v15, %v1144_v6  ;;  %v576_v18 = vmul.f32 %v564_v15, %v1139_v5  ;;  %v573_v19 = vmul.f32 %v559_v16, %v1136_v4  ;;  %v574_v20 = vmul.f32 %v559_v16, %v1131_v3 }
 0x394   : > { %583 = vst [vmem:[%s242_s7 + $0x20] sm:$0xff] %v575_v17  ;;  %584 = vst [vmem:[%s242_s7 + $0x28] sm:$0xff] %v576_v18 }
 0x395   : > { %581 = vst [vmem:[%s242_s7 + $0x10] sm:$0xff] %v573_v19  ;;  %582 = vst [vmem:[%s242_s7 + $0x18] sm:$0xff] %v574_v20  ;;  %v569_v1 = vpop.permute.xlu1 %568 }
 0x396   : > { %v577_v2 = vmul.f32 %v569_v1, %v1152_v8  ;;  %v578_v3 = vmul.f32 %v569_v1, %v1147_v7 }
 0x398   : > { %585 = vst [vmem:[%s242_s7 + $0x30] sm:$0xff] %v577_v2  ;;  %586 = vst [vmem:[%s242_s7 + $0x38] sm:$0xff] %v578_v3 }
 0x399   : > { %911 = shalt.err (!%p908_p2)
}
 0x39a   : > { %s912_s12 = scalar_lea.hbm %s1199_s13, 1024  ;;  %s916_s16 = scalar_lea.hbm %s1250_s5, 2048 }
 0x39b   : > { %p913_p4 = scmp.ne.s32.totalorder %s1199_s13, %s912_s12  ;;  %p917_p9 = scmp.lt.u32.totalorder %s1199_s13, %s1250_s5 }
 0x39c   : > { %p918_p1 = scmp.lt.u32.totalorder %s916_s16, %s912_s12  ;;  %p920_p6 = scmp.lt.u32.totalorder %s912_s12, %s1199_s13 }
 0x39d   : > { %p914_p5 = pnand %p913_p4, %p1257_p11 }
 0x39e   : > { %p919_p3 = por %p918_p1, %p917_p9 }
 0x39f   : > { %p915_p7 = pneg %p914_p5 }
 0x3a0   : > { %p921_p12 = por %p920_p6, %p919_p3 }
 0x3a2   : > { %p922_p13 = pnand %p921_p12, %p915_p7 }
 0x3a4   : > { %925 = shalt.err (!%p922_p13)
}
 0x3a5   : > { %s975_s10 = smov 256   ;;  %s976_s25 = smov 16  }
 0x3a6   : > { %797 = dma.vmem_to_hbm [thread:$0]  (%p1257_p11), %s1194_s9, 1024, %s1199_s13, %s588_s22, %s975_s10, %s975_s10, %s976_s25  }
 0x3a7 PF: > { %s616_s11 = sand.u32 1, %s952_s18   ;;  %p1258_p8 = scmp.ne.s32.totalorder %s1255_s6, 0 }
 0x3a8   : > { %p1259_p10 = scmp.ge.s32.totalorder %s964_s21, 2  ;;  %s617_s17 = scalar_lea.sflag [#allocation4], %s616_s11 }
 0x3aa   : > { %p804_p0 = pnand %p1259_p10, %p1258_p8 }
 0x3ac   : > { %947 = dma.done.wait (!%p804_p0), %s617_s17, 1024  }
 0x3ad   : > { %949 = vsyncadd (!%p804_p0), %s617_s17, 4294966272  ;;  %p18_p2 = scmp.ge.s32.totalorder %s1032_s24, 4   ;;  %s1260_s18 = smov %s956_s19 }
 0x3ae   : > { %s1261_s19 = smov %s960_s20  ;;  %s1262_s20 = smov %s1044_s27 }
 0x3af   : > { %s1263_s21 = smov %s1032_s24  ;;  %20 = sbr.rel (!%p18_p2) target bundleno = 5 (0x5), region = 85 }
 0x3b6   :  { %622 = vsyncpa [#allocation3], 1 }
 0x3b7   :  { %624 = vsyncpa [#allocation3 + $0x1], 1 }
 0x3b8   :  { %625 = vsyncpa [#allocation4], 1 }
 0x3b9   :  { %627 = vsyncpa [#allocation4 + $0x1], 1 }

</bundles_post_ra>
